<compile_context>
chip_gen: v5e
topology: v5e:2x2
jax: 0.10.0
libtpu: 0.0.40
codegen_flags: <defaults>
</compile_context>

<pallas_src>
import functools

import jax
import jax.numpy as jnp
import numpy as np
from jax import lax
from jax.experimental import pallas as pl
from jax.experimental.pallas import tpu as pltpu

EPS = 1e-5  # nn.InstanceNorm2d default


def _initconv_kernel(p_ref, w_ref, g_ref, beta_ref, o_ref):
    # p_ref:    (B_tile, K, 4*HWp)  conv patches, pool-position-major on lanes
    # w_ref:    (dim, K)            conv weight
    # g_ref:    (dim, 1)            InstanceNorm gamma
    # beta_ref: (dim, 1)            InstanceNorm beta
    # o_ref:    (B_tile, dim, HWp)  pooled + ReLU output (NCHW-native)
    w = w_ref[...]
    g = g_ref[...]
    beta = beta_ref[...]

    hwp = o_ref.shape[2]
    inv_ns = 1.0 / (4.0 * hwp)  # conv output has 4*HWp spatial positions

    # Static (small) batch-tile loop; each iteration is one MXU matmul plus
    # VPU/XLU/EUP epilogue that overlaps with the next instance's matmul.
    for b in range(p_ref.shape[0]):
        # Conv as one merged matmul: (dim, K) @ (K, 4*HWp) -> (dim, 4*HWp), f32 acc.
        y = jnp.dot(w, p_ref[b], preferred_element_type=jnp.float32)

        # InstanceNorm: per-channel stats over all conv spatial positions.
        mean = jnp.sum(y, axis=1, keepdims=True) * inv_ns          # (dim, 1)
        yc = y - mean
        var = jnp.sum(yc * yc, axis=1, keepdims=True) * inv_ns     # (dim, 1)
        z = yc * (g * lax.rsqrt(var + EPS)) + beta                 # (dim, 4*HWp)

        # 2x2 max-pool: the 4 window positions are contiguous lane blocks.
        pooled = jnp.maximum(
            jnp.maximum(z[:, 0 * hwp:1 * hwp], z[:, 1 * hwp:2 * hwp]),
            jnp.maximum(z[:, 2 * hwp:3 * hwp], z[:, 3 * hwp:4 * hwp]))

        o_ref[b] = jnp.maximum(pooled, 0.0).astype(o_ref.dtype)    # ReLU


def _im2col_pool_major(x, k=3, stride=2, pad=1):
    """NCHW -> (N, C*k*k, 4*Hp*Wp).

    Lane index = q*Hp*Wp + (hp*Wp + wp) with q = 2*dh + dw the position inside
    each 2x2 pool window.  K index = c*9 + kh*3 + kw (matches weight reshape).
    """
    n, c, h, w = x.shape
    ho = (h + 2 * pad - k) // stride + 1
    wo = (w + 2 * pad - k) // stride + 1
    hp, wp = ho // 2, wo // 2
    xp = jnp.pad(x, ((0, 0), (0, 0), (pad, pad), (pad, pad)))
    taps = []
    for kh in range(k):
        for kw in range(k):
            taps.append(xp[:, :, kh:kh + stride * ho:stride,
                           kw:kw + stride * wo:stride])          # (N, C, Ho, Wo)
    p = jnp.stack(taps, axis=2)                                  # (N, C, 9, Ho, Wo)
    p = p.reshape(n, c * k * k, ho, wo)
    p = p[:, :, :2 * hp, :2 * wp]                                # MaxPool floor behavior
    p = p.reshape(n, c * k * k, hp, 2, wp, 2)
    p = p.transpose(0, 1, 3, 5, 2, 4)                            # (N, K, 2, 2, Hp, Wp)
    return p.reshape(n, c * k * k, 4 * hp * wp)


def _pick_batch_tile(n, per_instance_bytes, target_bytes=512 * 1024):
    """Largest divisor of n that keeps >=2 grid steps (megacore / v7x 2 TCs) while
    getting each step to ~target_bytes of patch DMA (amortize ~0.35us/step)."""
    best = 1
    for bt in range(1, n + 1):
        if n % bt:
            continue
        if n >= 2 and n // bt < 2:
            break
        best = bt
        if bt * per_instance_bytes >= target_bytes:
            break
    return best


@functools.partial(jax.jit, static_argnames=("compute_dtype",))
def initconv_forward(x, weight, bias, gamma, beta, *, compute_dtype=jnp.bfloat16):
    """x: (N, C, H, W).  weight: (dim, C, 3, 3).  Returns (N, dim, Ho//2, Wo//2).

    `bias` is accepted for parity with the PyTorch module but unused: a per-channel
    constant added before InstanceNorm is exactly cancelled by the mean subtraction.
    """
    del bias
    n, c, h, w = x.shape
    dim = weight.shape[0]
    ho = (h + 2 - 3) // 2 + 1
    wo = (w + 2 - 3) // 2 + 1
    # InstanceNorm stats must cover the full conv output; require even conv output
    # so the pooled region equals the full conv output (true for this module's use).
    assert ho % 2 == 0 and wo % 2 == 0, "conv output H/W must be even"
    hp, wp = ho // 2, wo // 2
    hwp = hp * wp
    s4 = 4 * hwp
    kk = c * 9

    patches = _im2col_pool_major(x).astype(compute_dtype)        # (N, K, 4*HWp)
    w2 = weight.reshape(dim, kk).astype(compute_dtype)           # (dim, K)
    g2 = gamma.reshape(dim, 1).astype(jnp.float32)
    be2 = beta.reshape(dim, 1).astype(jnp.float32)

    itemsize = jnp.dtype(compute_dtype).itemsize
    b_tile = _pick_batch_tile(n, kk * s4 * itemsize)

    # Explicit VMEM budget: double-buffered patch + output blocks + resident params.
    need = (2 * (b_tile * kk * s4 * itemsize + b_tile * dim * hwp * 4)
            + dim * kk * itemsize + 2 * dim * 4)
    vmem_limit = int(min(32 * 2 ** 20, max(16 * 2 ** 20, 4 * need)))

    out = pl.pallas_call(
        _initconv_kernel,
        out_shape=jax.ShapeDtypeStruct((n, dim, hwp), jnp.float32),
        grid_spec=pltpu.PrefetchScalarGridSpec(
            num_scalar_prefetch=0,
            grid=(n // b_tile,),
            in_specs=[
                pl.BlockSpec((b_tile, kk, s4), lambda i: (i, 0, 0)),
                pl.BlockSpec((dim, kk), lambda i: (0, 0)),
                pl.BlockSpec((dim, 1), lambda i: (0, 0)),
                pl.BlockSpec((dim, 1), lambda i: (0, 0)),
            ],
            out_specs=pl.BlockSpec((b_tile, dim, hwp), lambda i: (i, 0, 0)),
        ),
        compiler_params=pltpu.CompilerParams(
            dimension_semantics=("parallel",),
            vmem_limit_bytes=vmem_limit),
    )(patches, w2, g2, be2)

    return out.reshape(n, dim, hp, wp)   # already NCHW -- no transpose needed


def _reference_forward(x, weight, bias, gamma, beta):
    y = lax.conv_general_dilated(
        x.astype(jnp.float32), weight.astype(jnp.float32),
        window_strides=(2, 2), padding=((1, 1), (1, 1)),
        dimension_numbers=("NCHW", "OIHW", "NCHW"))
    y = y + bias[None, :, None, None]
    mean = y.mean(axis=(2, 3), keepdims=True)
    var = y.var(axis=(2, 3), keepdims=True)
    yn = (y - mean) * lax.rsqrt(var + EPS)
    yn = yn * gamma[None, :, None, None] + beta[None, :, None, None]
    pooled = lax.reduce_window(yn, -jnp.inf, lax.max,
                               (1, 1, 2, 2), (1, 1, 2, 2), "VALID")
    return jnp.maximum(pooled, 0.0)


if __name__ == "__main__":
    key = jax.random.PRNGKey(0)
    k_x, k_w, k_b, k_g, k_be = jax.random.split(key, 5)

    N, C, H, W, DIM = 2, 4, 16, 16, 32
    x = jax.random.normal(k_x, (N, C, H, W), dtype=jnp.float32)
    weight = 0.1 * jax.random.normal(k_w, (DIM, C, 3, 3), dtype=jnp.float32)
    bias = 0.1 * jax.random.normal(k_b, (DIM,), dtype=jnp.float32)
    gamma = 1.0 + 0.1 * jax.random.normal(k_g, (DIM,), dtype=jnp.float32)
    beta = 0.1 * jax.random.normal(k_be, (DIM,), dtype=jnp.float32)

    ref = jax.block_until_ready(_reference_forward(x, weight, bias, gamma, beta))

    # f32 compute path: tight numerical check of the fused kernel math.
    out_f32 = jax.block_until_ready(
        initconv_forward(x, weight, bias, gamma, beta, compute_dtype=jnp.float32))
    np.testing.assert_allclose(np.asarray(out_f32), np.asarray(ref),
                               rtol=1e-4, atol=1e-4)

    # bf16 MXU path (production config): f32 accumulation/stats, so only bf16
    # input quantization error remains -> looser tolerance.
    out_bf16 = jax.block_until_ready(
        initconv_forward(x, weight, bias, gamma, beta, compute_dtype=jnp.bfloat16))
    np.testing.assert_allclose(np.asarray(out_bf16), np.asarray(ref),
                               rtol=5e-2, atol=5e-2)

    assert out_f32.shape == (N, DIM, H // 4, W // 4)
    print("KERNEL_OK")
</pallas_src>

<mosaic_0001>
module attributes {stable_mosaic.version = 11 : i64} {
  func.func @_initconv_kernel(%arg0: i32, %arg1: memref<1x36x64xf32, #tpu.memory_space<vmem>>, %arg2: memref<32x36xf32, #tpu.memory_space<vmem>>, %arg3: memref<32x1xf32, #tpu.memory_space<vmem>>, %arg4: memref<32x1xf32, #tpu.memory_space<vmem>>, %arg5: memref<1x32x16xf32, #tpu.memory_space<vmem>>) attributes {dimension_semantics = [#tpu.dimension_semantics<parallel>], iteration_bounds = array<i64: 2>, scalar_prefetch = 0 : i64, scratch_operands = 0 : i64, tpu.core_type = #tpu.core_type<tc>, window_params = [{transform_indices = @transform_0, window_bounds = array<i64: 1, 36, 64>}, {pipeline_mode = #tpu.pipeline_mode<synchronous>, transform_indices = @transform_1, window_bounds = array<i64: 32, 36>}, {pipeline_mode = #tpu.pipeline_mode<synchronous>, transform_indices = @transform_2, window_bounds = array<i64: 32, 1>}, {pipeline_mode = #tpu.pipeline_mode<synchronous>, transform_indices = @transform_3, window_bounds = array<i64: 32, 1>}, {transform_indices = @transform_4, window_bounds = array<i64: 1, 32, 16>}]} {
    %c0 = arith.constant 0 : index
    %c0_0 = arith.constant 0 : index
    %0 = vector.load %arg2[%c0, %c0_0] : memref<32x36xf32, #tpu.memory_space<vmem>>, vector<32x36xf32>
    %c0_1 = arith.constant 0 : index
    %c0_2 = arith.constant 0 : index
    %1 = vector.load %arg3[%c0_1, %c0_2] : memref<32x1xf32, #tpu.memory_space<vmem>>, vector<32x1xf32>
    %c0_3 = arith.constant 0 : index
    %c0_4 = arith.constant 0 : index
    %2 = vector.load %arg4[%c0_3, %c0_4] : memref<32x1xf32, #tpu.memory_space<vmem>>, vector<32x1xf32>
    %c0_5 = arith.constant 0 : index
    %c0_6 = arith.constant 0 : index
    %c0_7 = arith.constant 0 : index
    %3 = vector.load %arg1[%c0_5, %c0_6, %c0_7] : memref<1x36x64xf32, #tpu.memory_space<vmem>>, vector<1x36x64xf32>
    %4 = vector.shape_cast %3 : vector<1x36x64xf32> to vector<36x64xf32>
    %cst = arith.constant dense<0.000000e+00> : vector<32x64xf32>
    %5 = tpu.matmul %0, %4, %cst {dimension_numbers = #tpu.dot_dimension_numbers<[1], [0], [0], [1], [0, 0, 1, 1], [], []>} : vector<32x36xf32>, vector<36x64xf32>, vector<32x64xf32> -> vector<32x64xf32>
    %cst_8 = arith.constant dense<0.000000e+00> : vector<32xf32>
    %6 = vector.multi_reduction <add>, %5, %cst_8 [1] : vector<32x64xf32> to vector<32xf32>
    %7 = vector.shape_cast %6 : vector<32xf32> to vector<32x1xf32>
    %cst_9 = arith.constant 1.562500e-02 : f32
    %8 = vector.broadcast %cst_9 : f32 to vector<32x1xf32>
    %9 = arith.mulf %7, %8 : vector<32x1xf32>
    %10 = vector.broadcast %9 : vector<32x1xf32> to vector<32x64xf32>
    %11 = arith.subf %5, %10 : vector<32x64xf32>
    %12 = arith.mulf %11, %11 : vector<32x64xf32>
    %cst_10 = arith.constant dense<0.000000e+00> : vector<32xf32>
    %13 = vector.multi_reduction <add>, %12, %cst_10 [1] : vector<32x64xf32> to vector<32xf32>
    %14 = vector.shape_cast %13 : vector<32xf32> to vector<32x1xf32>
    %cst_11 = arith.constant 1.562500e-02 : f32
    %15 = vector.broadcast %cst_11 : f32 to vector<32x1xf32>
    %16 = arith.mulf %14, %15 : vector<32x1xf32>
    %cst_12 = arith.constant 9.99999974E-6 : f32
    %17 = vector.broadcast %cst_12 : f32 to vector<32x1xf32>
    %18 = arith.addf %16, %17 : vector<32x1xf32>
    %19 = math.rsqrt %18 : vector<32x1xf32>
    %20 = arith.mulf %1, %19 : vector<32x1xf32>
    %21 = vector.broadcast %20 : vector<32x1xf32> to vector<32x64xf32>
    %22 = arith.mulf %11, %21 : vector<32x64xf32>
    %23 = vector.broadcast %2 : vector<32x1xf32> to vector<32x64xf32>
    %24 = arith.addf %22, %23 : vector<32x64xf32>
    %25 = vector.extract_strided_slice %24 {offsets = [0, 0], sizes = [32, 16], strides = [1, 1]} : vector<32x64xf32> to vector<32x16xf32>
    %26 = vector.extract_strided_slice %24 {offsets = [0, 16], sizes = [32, 16], strides = [1, 1]} : vector<32x64xf32> to vector<32x16xf32>
    %27 = arith.maximumf %25, %26 : vector<32x16xf32>
    %28 = vector.extract_strided_slice %24 {offsets = [0, 32], sizes = [32, 16], strides = [1, 1]} : vector<32x64xf32> to vector<32x16xf32>
    %29 = vector.extract_strided_slice %24 {offsets = [0, 48], sizes = [32, 16], strides = [1, 1]} : vector<32x64xf32> to vector<32x16xf32>
    %30 = arith.maximumf %28, %29 : vector<32x16xf32>
    %31 = arith.maximumf %27, %30 : vector<32x16xf32>
    %cst_13 = arith.constant 0.000000e+00 : f32
    %32 = vector.broadcast %cst_13 : f32 to vector<32x16xf32>
    %33 = arith.maximumf %31, %32 : vector<32x16xf32>
    %c0_14 = arith.constant 0 : index
    %c0_15 = arith.constant 0 : index
    %c0_16 = arith.constant 0 : index
    %34 = vector.load %arg5[%c0_14, %c0_15, %c0_16] : memref<1x32x16xf32, #tpu.memory_space<vmem>>, vector<1x32x16xf32>
    %35 = vector.shape_cast %34 : vector<1x32x16xf32> to vector<32x16xf32>
    %36 = vector.shape_cast %33 : vector<32x16xf32> to vector<1x32x16xf32>
    tpu.vector_store %arg5[%c0_14, %c0_15, %c0_16], %36 {strides = array<i32>} : memref<1x32x16xf32, #tpu.memory_space<vmem>>, vector<1x32x16xf32>,
    return
  }
  func.func @transform_0(%arg0: i32) -> (i32, i32, i32) {
    %c0_i32 = arith.constant 0 : i32
    %c0_i32_0 = arith.constant 0 : i32
    %c0_i32_1 = arith.constant 0 : i32
    return %arg0, %c0_i32, %c0_i32_0 : i32, i32, i32
  }
  func.func @transform_1(%arg0: i32) -> (i32, i32) {
    %c0_i32 = arith.constant 0 : i32
    %c0_i32_0 = arith.constant 0 : i32
    %c0_i32_1 = arith.constant 0 : i32
    return %c0_i32, %c0_i32_0 : i32, i32
  }
  func.func @transform_2(%arg0: i32) -> (i32, i32) {
    %c0_i32 = arith.constant 0 : i32
    %c0_i32_0 = arith.constant 0 : i32
    %c0_i32_1 = arith.constant 0 : i32
    return %c0_i32, %c0_i32_0 : i32, i32
  }
  func.func @transform_3(%arg0: i32) -> (i32, i32) {
    %c0_i32 = arith.constant 0 : i32
    %c0_i32_0 = arith.constant 0 : i32
    %c0_i32_1 = arith.constant 0 : i32
    return %c0_i32, %c0_i32_0 : i32, i32
  }
  func.func @transform_4(%arg0: i32) -> (i32, i32, i32) {
    %c0_i32 = arith.constant 0 : i32
    %c0_i32_0 = arith.constant 0 : i32
    %c0_i32_1 = arith.constant 0 : i32
    return %arg0, %c0_i32, %c0_i32_0 : i32, i32, i32
  }
}

</mosaic_0001>

<bundles_post_ra>
// kernel: initconv_forward.1
= control target key start
LH: loop header
LB: loop body
LE: loop exit
PB: predicated region body
PF: predicated region fallthrough
CT: control target
= control target key end

     0   :  { %s592_s15 = smov 0   ;;  %s677_s0 = inlined_call_operand.vmem [shape: f32[2,36,64], index: 0, kind: input, shape index: {}]   ;;  %s678_s1 = inlined_call_operand.vmem [shape: f32[32,36], index: 1, kind: input, shape index: {}]   ;;  %s679_s2 = inlined_call_operand.vmem [shape: f32[32,1], index: 2, kind: input, shape index: {}]   ;;  %s680_s3 = inlined_call_operand.vmem [shape: f32[32,1], index: 3, kind: input, shape index: {}]   ;;  %s681_s4 = inlined_call_operand.vmem [shape: f32[2,32,16], index: 4, kind: output, shape index: {}]  }
   0x1 LB: > { %s502_s16 = sadd.s32 4294967295, %s562_s15   ;;  %p506_p0 = scmp.ge.s32.totalorder %s562_s15, 1  ;;  %s562_s15 = sphi %s592_s15, %s14_s15  }
   0x2   : > { %p162_p1 = scmp.lt.s32.totalorder %s562_s15, 3 }
   0x4   : > { %p163_p2 = pnand %p506_p0, %p162_p1 }
   0x5   : > { %p188_p3 = scmp.lt.s32.totalorder (!%p163_p2), %s502_s16, 1  ;;  %s565_s21 = smov (!%p163_p2), 112  }
   0x6   : > { %166 = sbr.rel (%p163_p2) target bundleno = 777 (0x309), region = 36  ;;  %s566_s22 = smov (!%p163_p2), 96  }
   0xb   : > { %s683_s16 = smov (!%p188_p3, %s502_s16), 1  ;;  %vm228_vm0 = vcmask 1043456   ;;  %v198_v5 = vld [vmem:[%s678_s1] sm:$0xff]  ;;  %vm215_vm1 = vcmask 293888   ;;  %v200_v6 = vld [vmem:[%s678_s1 + $0x10] sm:$0xff]  ;;  %v199_v7 = vld [vmem:[%s678_s1 + $0x8] sm:$0xff] }
   0xc   : > { %s533_s17 = smul.u32 40, %s683_s16  ;;  %v201_v8 = vld [vmem:[%s678_s1 + $0x18] sm:$0xff]  ;;  %vm261_vm2 = vcmask 523264   ;;  %v564_v37 = vmov 0   ;;  %v207_v38 = vld [vmem:[%s680_s3 + $0x8] sm:$0xff]  ;;  %v202_v61 = vld [vmem:[%s679_s2] sm:$0xff] }
   0xd   : > { %547 = vset.pattern.permute.xlu1 %v564_v37  ;;  %545 = vset.pattern.permute.xlu2 %v564_v37  ;;  %s517_s23 = sshll.u32 %s683_s16, 5  ;;  %vm442_vm15 = vcmask 130048  }
   0xe   : > { %s192_s20 = scalar_lea.vmem %s677_s0, %s533_s17  ;;  %546 = vset.pattern.permute.xlu0 %v564_v37  ;;  %s197_s26 = scalar_lea.vmem %s681_s4, %s517_s23 }
   0xf   : > { %v214_v0 = vld [vmem:[%s192_s20 + $0x20] sm:$0xf]  ;;  %v213_v1 = vld [vmem:[%s192_s20 + $0x18] sm:$0xff]  ;;  %v212_v2 = vld [vmem:[%s192_s20 + $0x10] sm:$0xff] }
  0x10   : > { %510 = vmatpush.msk.msra.mxu0 %vm228_vm0, %v214_v0  ;;  %519 = vmatpush.msk.msra.mxu2 %vm228_vm0, %v214_v0  ;;  %v211_v3 = vld [vmem:[%s192_s20 + $0x8] sm:$0xff]  ;;  %v210_v4 = vld [vmem:[%s192_s20] sm:$0xff] }
  0x11   : > { %518 = vmatpush.msk.msra.mxu1 %vm228_vm0, %v214_v0  ;;  %520 = vmatpush.msk.msra.mxu3 %vm228_vm0, %v214_v0 }
  0x12   : > { %244 = vmatpush.msra.mxu0 %v213_v1  ;;  %522 = vmatpush.msra.mxu2 %v213_v1 }
  0x13   : > { %521 = vmatpush.msra.mxu1 %v213_v1  ;;  %523 = vmatpush.msra.mxu3 %v213_v1 }
  0x14   : > { %245 = vmatpush.msra.mxu0 %v212_v2  ;;  %525 = vmatpush.msra.mxu2 %v212_v2 }
  0x15   : > { %524 = vmatpush.msra.mxu1 %v212_v2  ;;  %526 = vmatpush.msra.mxu3 %v212_v2 }
  0x16   : > { %246 = vmatpush.msra.mxu0 %v211_v3  ;;  %528 = vmatpush.msra.mxu2 %v211_v3 }
  0x17   : > { %527 = vmatpush.msra.mxu1 %v211_v3  ;;  %529 = vmatpush.msra.mxu3 %v211_v3 }
  0x18   : > { %247 = vmatpush.msra.mxu0 %v210_v4  ;;  %531 = vmatpush.msra.mxu2 %v210_v4 }
  0x19   : > { %511 = vmatmul.msk.f32.vlgmr.msra.gmra.mxu0 %vm215_vm1, %v198_v5  ;;  %513 = vmatmul.msk.f32.vlgmr.msra.gmra.mxu2 %vm215_vm1, %v200_v6 }
  0x1a   : > { %530 = vmatpush.msra.mxu1 %v210_v4  ;;  %532 = vmatpush.msra.mxu3 %v210_v4 }
  0x1b   : > { %512 = vmatmul.msk.f32.vlgmr.msra.gmra.mxu1 %vm215_vm1, %v199_v7  ;;  %514 = vmatmul.msk.f32.vlgmr.msra.gmra.mxu3 %vm215_vm1, %v201_v8  ;;  %v204_v8 = vld [vmem:[%s679_s2 + $0x10] sm:$0xff] }
  0x96   : > { %v249_v9 = vpop.f32.mrf.mxu0 }
  0x97   : > { %v262_v10 = vsel %vm261_vm2, %v249_v9, 0.0 }
  0x98   : > { %263 = vadd.xlane.f32.xlu0 %v262_v10  ;;  %v252_v11 = vpop.f32.mrf.mxu1 }
  0x99   : > { %v265_v14 = vsel %vm261_vm2, %v252_v11, 0.0 }
  0x9c   : > { %v255_v12 = vpop.f32.mrf.mxu2 }
  0x9d   : > { %v268_v13 = vsel %vm261_vm2, %v255_v12, 0.0 }
  0x9e   : > { %269 = vadd.xlane.f32.xlu1 %v268_v13  ;;  %v258_v15 = vpop.f32.mrf.mxu3 }
  0x9f   : > { %v271_v16 = vsel %vm261_vm2, %v258_v15, 0.0 }
  0xa0   : > { %266 = vadd.xlane.f32.xlu0 %v265_v14 }
  0xa6   : > { %272 = vadd.xlane.f32.xlu1 %v271_v16  ;;  %v206_v16 = vld [vmem:[%s680_s3] sm:$0xff] }
 0x10b   : > { %v264_v17 = vpop.xlane.xlu0 %263 }
 0x10c   : > { %v274_v18 = vmul.f32 0.015625, %v264_v17 }
 0x10e   : > { %v622_v19 = vsub.f32 %v249_v9, %v274_v18 }
 0x110   : > { %v282_v20 = vmul.f32 %v622_v19, %v622_v19 }
 0x111   : > { %v270_v21 = vpop.xlane.xlu1 %269 }
 0x112   : > { %v276_v22 = vmul.f32 0.015625, %v270_v21  ;;  %v286_v23 = vsel %vm261_vm2, %v282_v20, 0.0 }
 0x113   : > { %287 = vadd.xlane.f32.xlu2 %v286_v23  ;;  %v267_v24 = vpop.xlane.xlu0 %266  ;;  %v205_v23 = vld [vmem:[%s679_s2 + $0x18] sm:$0xff] }
 0x114   : > { %v627_v25 = vsub.f32 %v255_v12, %v276_v22  ;;  %v275_v26 = vmul.f32 0.015625, %v267_v24  ;;  %v203_v12 = vld [vmem:[%s679_s2 + $0x8] sm:$0xff]  ;;  %v209_v22 = vld [vmem:[%s680_s3 + $0x18] sm:$0xff] }
 0x116   : > { %v629_v27 = vsub.f32 %v252_v11, %v275_v26  ;;  %v284_v28 = vmul.f32 %v627_v25, %v627_v25 }
 0x118   : > { %v292_v29 = vsel %vm261_vm2, %v284_v28, 0.0  ;;  %v283_v30 = vmul.f32 %v629_v27, %v629_v27  ;;  %v208_v28 = vld [vmem:[%s680_s3 + $0x10] sm:$0xff] }
 0x119   : > { %v273_v31 = vpop.xlane.xlu1 %272  ;;  %293 = vadd.xlane.f32.xlu0 %v292_v29 }
 0x11a   : > { %v277_v32 = vmul.f32 0.015625, %v273_v31  ;;  %v289_v33 = vsel %vm261_vm2, %v283_v30, 0.0 }
 0x11b   : > { %290 = vadd.xlane.f32.xlu2 %v289_v33 }
 0x11c   : > { %v637_v34 = vsub.f32 %v258_v15, %v277_v32 }
 0x11e   : > { %v285_v35 = vmul.f32 %v637_v34, %v637_v34 }
 0x120   : > { %v295_v36 = vsel %vm261_vm2, %v285_v35, 0.0 }
 0x121   : > { %296 = vadd.xlane.f32.xlu1 %v295_v36 }
 0x13a   : > { %381 = vperm.xlu1 %547, %v207_v38  }
 0x186   : > { %v288_v39 = vpop.xlane.xlu2 %287 }
 0x187   : > { %v298_v40 = vmul.f32 0.015625, %v288_v39 }
 0x189   : > { %v302_v41 = vadd.f32 1e-05, %v298_v40 }
 0x18b   : > { %548 = vrsqrt.f32 %v302_v41  ;;  %vm312_vm4 = vweird.f32 %v302_v41 }
 0x18c   : > { %v294_v42 = vpop.xlane.xlu0 %293 }
 0x18d   : > { %v300_v43 = vmul.f32 0.015625, %v294_v42 }
 0x18e   : > { %v291_v44 = vpop.xlane.xlu2 %290 }
 0x18f   : > { %v304_v45 = vadd.f32 1e-05, %v300_v43  ;;  %v299_v46 = vmul.f32 0.015625, %v291_v44 }
 0x191   : > { %v549_v47 = vpop.eup %548  ;;  %550 = vrsqrt.f32 %v304_v45  ;;  %v303_v48 = vadd.f32 1e-05, %v299_v46  ;;  %vm332_vm7 = vweird.f32 %v304_v45 }
 0x192   : > { %v307_v49 = vmul.f32 %v549_v47, %v302_v41  ;;  %vm313_vm3 = vweird.f32 %v549_v47 }
 0x193   : > { %552 = vrsqrt.f32 %v303_v48  ;;  %vm314_vm5 = vmor %vm312_vm4, %vm313_vm3  ;;  %vm322_vm10 = vweird.f32 %v303_v48 }
 0x194   : > { %v308_v50 = vmul.f32 %v549_v47, %v307_v49  ;;  %v297_v51 = vpop.xlane.xlu1 %296 }
 0x195   : > { %v301_v52 = vmul.f32 0.015625, %v297_v51 }
 0x196   : > { %v309_v53 = vmul.f32 0.5, %v308_v50 }
 0x197   : > { %v551_v54 = vpop.eup %550  ;;  %v305_v55 = vadd.f32 1e-05, %v301_v52 }
 0x198   : > { %v310_v56 = vsub.f32 1.5, %v309_v53  ;;  %v327_v57 = vmul.f32 %v551_v54, %v304_v45  ;;  %vm333_vm6 = vweird.f32 %v551_v54 }
 0x199   : > { %v553_v58 = vpop.eup %552  ;;  %554 = vrsqrt.f32 %v305_v55  ;;  %vm334_vm9 = vmor %vm332_vm7, %vm333_vm6  ;;  %vm342_vm13 = vweird.f32 %v305_v55 }
 0x19a   : > { %v328_v59 = vmul.f32 %v551_v54, %v327_v57  ;;  %v317_v60 = vmul.f32 %v553_v58, %v303_v48  ;;  %v311_v62 = vmul.f32 %v549_v47, %v310_v56  ;;  %vm323_vm8 = vweird.f32 %v553_v58 }
 0x19b   : > { %vm324_vm11 = vmor %vm322_vm10, %vm323_vm8 }
 0x19c   : > { %v329_v63 = vmul.f32 0.5, %v328_v59  ;;  %v318_v0 = vmul.f32 %v553_v58, %v317_v60  ;;  %v315_v1 = vsel %vm314_vm5, %v549_v47, %v311_v62 }
 0x19d   : > { %v346_v2 = vmul.f32 %v315_v1, %v202_v61 }
 0x19e   : > { %v330_v3 = vsub.f32 1.5, %v329_v63  ;;  %v319_v4 = vmul.f32 0.5, %v318_v0 }
 0x19f   : > { %v555_v5 = vpop.eup %554  ;;  %352 = vperm.xlu2 %545, %v346_v2  }
 0x1a0   : > { %v320_v6 = vsub.f32 1.5, %v319_v4  ;;  %v337_v7 = vmul.f32 %v555_v5, %v305_v55  ;;  %v331_v9 = vmul.f32 %v551_v54, %v330_v3  ;;  %vm343_vm12 = vweird.f32 %v555_v5 }
 0x1a1   : > { %vm344_vm14 = vmor %vm342_vm13, %vm343_vm12 }
 0x1a2   : > { %v338_v10 = vmul.f32 %v555_v5, %v337_v7  ;;  %v335_v11 = vsel %vm334_vm9, %v551_v54, %v331_v9  ;;  %v321_v13 = vmul.f32 %v553_v58, %v320_v6 }
 0x1a3   : > { %v348_v14 = vmul.f32 %v335_v11, %v204_v8 }
 0x1a4   : > { %v339_v15 = vmul.f32 0.5, %v338_v10  ;;  %v325_v17 = vsel %vm324_vm11, %v553_v58, %v321_v13 }
 0x1a5   : > { %362 = vperm.xlu1 %547, %v348_v14   ;;  %v347_v18 = vmul.f32 %v325_v17, %v203_v12 }
 0x1a6   : > { %v340_v20 = vsub.f32 1.5, %v339_v15 }
 0x1a7   : > { %376 = vperm.xlu2 %545, %v206_v16   ;;  %357 = vperm.xlu0 %546, %v347_v18  }
 0x1a8   : > { %v341_v21 = vmul.f32 %v555_v5, %v340_v20 }
 0x1aa   : > { %v345_v24 = vsel %vm344_vm14, %v555_v5, %v341_v21 }
 0x1ab   : > { %v349_v26 = vmul.f32 %v345_v24, %v205_v23 }
 0x1ac   : > { %v382_v33 = vpop.permute.xlu1 %381 }
 0x1ad   : > { %391 = vperm.xlu1 %547, %v209_v22  }
 0x1af   : > { %367 = vperm.xlu2 %545, %v349_v26  }
 0x1b7   : > { %386 = vperm.xlu2 %545, %v208_v28  }
 0x1f9   : > { %v353_v29 = vpop.permute.xlu2 %352 }
 0x1fa   : > { %v370_v30 = vmul.f32 %v353_v29, %v622_v19 }
 0x201   : > { %v377_v31 = vpop.permute.xlu2 %376 }
 0x202   : > { %v394_v32 = vadd.f32 %v377_v31, %v370_v30 }
 0x204   : > { %402 = vrot.lane.b32.xlu0 %v394_v32, %s565_s21 }
 0x209   : > { %v368_v35 = vpop.permute.xlu2 %367 }
 0x20a   : > { %v373_v43 = vmul.f32 %v368_v35, %v637_v34 }
 0x211   : > { %v387_v38 = vpop.permute.xlu2 %386 }
 0x217   : > { %v363_v36 = vpop.permute.xlu1 %362 }
 0x218   : > { %v372_v37 = vmul.f32 %v363_v36, %v627_v25 }
 0x219   : > { %v358_v39 = vpop.permute.xlu0 %357 }
 0x21a   : > { %v396_v40 = vadd.f32 %v387_v38, %v372_v37  ;;  %v371_v41 = vmul.f32 %v358_v39, %v629_v27 }
 0x21c   : > { %v395_v42 = vadd.f32 %v382_v33, %v371_v41  ;;  %406 = vrot.lane.b32.xlu1 %v396_v40, %s565_s21 }
 0x21e   : > { %404 = vrot.lane.b32.xlu2 %v395_v42, %s565_s21 }
 0x21f   : > { %v392_v19 = vpop.permute.xlu1 %391 }
 0x220   : > { %v397_v44 = vadd.f32 %v392_v19, %v373_v43 }
 0x222   : > { %408 = vrot.lane.b32.xlu0 %v397_v44, %s565_s21 }
 0x276   : > { %v403_v45 = vpop.permute.xlu0 %402 }
 0x277   : > { %v414_v46 = vmax.f32 %v394_v32, %v403_v45 }
 0x278   : > { %v405_v47 = vpop.permute.xlu2 %404 }
 0x279   : > { %v415_v48 = vmax.f32 %v395_v42, %v405_v47  ;;  %422 = vrot.lane.b32.xlu2 %v414_v46, %s566_s22 }
 0x27b   : > { %424 = vrot.lane.b32.xlu1 %v415_v48, %s566_s22 }
 0x28e   : > { %v407_v25 = vpop.permute.xlu1 %406 }
 0x28f   : > { %v416_v49 = vmax.f32 %v396_v40, %v407_v25 }
 0x291   : > { %426 = vrot.lane.b32.xlu0 %v416_v49, %s566_s22 }
 0x294   : > { %v409_v27 = vpop.permute.xlu0 %408 }
 0x295   : > { %v417_v50 = vmax.f32 %v397_v44, %v409_v27 }
 0x297   : > { %428 = vrot.lane.b32.xlu2 %v417_v50, %s566_s22 }
 0x2d3   : > { %v423_v34 = vpop.permute.xlu2 %422 }
 0x2d4   : > { %v434_v51 = vmax.f32 %v414_v46, %v423_v34 }
 0x2d6   : > { %v438_v52 = vmax.f32 %v434_v51, 0.0 }
 0x2d8   : > { %443 = vst.msk [vmem:[%s197_s26] sm:$0xff] %vm442_vm15, %v438_v52 }
 0x2ed   : > { %v425_v53 = vpop.permute.xlu1 %424 }
 0x2ee   : > { %v435_v54 = vmax.f32 %v415_v48, %v425_v53 }
 0x2f0   : > { %v439_v55 = vmax.f32 %v435_v54, 0.0 }
 0x2f1   : > { %v429_v56 = vpop.permute.xlu2 %428 }
 0x2f2   : > { %444 = vst.msk [vmem:[%s197_s26 + $0x8] sm:$0xff] %vm442_vm15, %v439_v55  ;;  %v437_v57 = vmax.f32 %v417_v50, %v429_v56 }
 0x2f4   : > { %v441_v58 = vmax.f32 %v437_v57, 0.0 }
 0x2f6   : > { %446 = vst.msk [vmem:[%s197_s26 + $0x18] sm:$0xff] %vm442_vm15, %v441_v58 }
 0x303   : > { %v427_v59 = vpop.permute.xlu0 %426 }
 0x304   : > { %v436_v60 = vmax.f32 %v416_v49, %v427_v59 }
 0x306   : > { %v440_v61 = vmax.f32 %v436_v60, 0.0 }
 0x308   : > { %445 = vst.msk [vmem:[%s197_s26 + $0x10] sm:$0xff] %vm442_vm15, %v440_v61 }
 0x309 PF: > { %s14_s15 = sadd.s32 1, %s562_s15  }
 0x30a   : > { %p11_p4 = scmp.ge.s32.totalorder %s14_s15, 4  }
 0x30c   :  { %13 = sbr.rel (!%p11_p4) target bundleno = 1 (0x1), region = 66 }

</bundles_post_ra>
